<compile_context>
chip_gen: v5e
topology: v5e:2x2
jax: 0.10.0
libtpu: 0.0.40
codegen_flags: <defaults>
</compile_context>

<pallas_src>
import math

import numpy as np
import jax
import jax.numpy as jnp
from jax.experimental import pallas as pl
from jax.experimental.pallas import tpu as pltpu


# ----------------------------- small helpers -------------------------------

def _vmem_limit_bytes():
    """~3/4 of physical VMEM (96 MiB on v5e/v6e, 48 MiB on v7x)."""
    try:
        cap = int(pltpu.get_tpu_info().vmem_capacity_bytes)
        return max(32 * 1024 * 1024, (cap * 3) // 4)
    except Exception:  # interpret mode / older jax: conservative default
        return 48 * 1024 * 1024


def _pick_strip_rows(s_h, target):
    """Largest divisor of s_h that is <= target and a multiple of 8 (or s_h)."""
    for d in range(min(target, s_h), 0, -1):
        if s_h % d == 0 and (d % 8 == 0 or d == s_h):
            return d
    return s_h


def _bilinear_1d(in_size, scale):
    # PyTorch interpolate(mode='bilinear', align_corners=False) source mapping.
    # NOTE: matches F.interpolate(scale_factor=s) for integer s (out == in*s);
    # non-integer scales would need the (d+0.5)*in/out-0.5 mapping instead.
    out_size = int(math.floor(in_size * scale))
    m = np.zeros((out_size, in_size), dtype=np.float32)
    for d in range(out_size):
        src = (d + 0.5) / scale - 0.5
        src = max(src, 0.0)
        i0 = int(math.floor(src))
        lam = src - i0
        i1 = min(i0 + 1, in_size - 1)
        m[d, i0] += 1.0 - lam
        m[d, i1] += lam
    return m


# ----------------------------- Pallas kernels ------------------------------

def hresize_strips(x_ld, wh_strips, *, tr, dot_dtype):
    """Bilinear H-resize into per-strip row blocks (with duplicated halo rows).

    x_ld:      (B, H, W*Cin)   dot_dtype, lane-dense
    wh_strips: (nR, TR+2, H)   f32 rows of the zero-padded (sH+2, H) matrix
                               (zero first/last rows -> 3x3-conv top/bottom halo)
    returns    (B, nR, TR+2, W*Cin) dot_dtype
    """
    B, H, WC = x_ld.shape
    nR, trp2, _ = wh_strips.shape
    assert trp2 == tr + 2

    def kernel(x_ref, whs_ref, o_ref):
        res = jnp.dot(whs_ref[0].astype(dot_dtype), x_ref[0],
                      preferred_element_type=jnp.float32)
        o_ref[0, 0] = res.astype(o_ref.dtype)

    flops = 2 * B * nR * trp2 * H * WC
    bytes_acc = (x_ld.size * x_ld.dtype.itemsize + wh_strips.size * 4
                 + B * nR * trp2 * WC * jnp.dtype(dot_dtype).itemsize)
    return pl.pallas_call(
        kernel,
        out_shape=jax.ShapeDtypeStruct((B, nR, trp2, WC), dot_dtype),
        grid_spec=pltpu.PrefetchScalarGridSpec(
            num_scalar_prefetch=0,
            grid=(B, nR),
            in_specs=[pl.BlockSpec((1, H, WC), lambda b, r: (b, 0, 0)),
                      pl.BlockSpec((1, trp2, H), lambda b, r: (r, 0, 0))],
            out_specs=pl.BlockSpec((1, 1, trp2, WC), lambda b, r: (b, r, 0, 0)),
        ),
        compiler_params=pltpu.CompilerParams(
            dimension_semantics=("parallel", "parallel"),
            vmem_limit_bytes=_vmem_limit_bytes()),
        cost_estimate=pl.CostEstimate(flops=int(flops), transcendentals=0,
                                      bytes_accessed=int(bytes_acc)),
    )(x_ld, wh_strips)


def fused_level(y, hsums, wl, bl, ww_pad, wk, bk, *, tr, s_w, dot_dtype):
    """Fused lateral 1x1 conv + W-resize + exact bias + 3x3 conv, per row strip.

    y:      (B, nR, (TR+2)*W, Cin) dot_dtype  H-resized strips (zero halo rows)
    hsums:  (nR, TR+2, 1) f32                 row sums of the strip's wh rows
    wl:     (Cin, C) dot_dtype    bl/bk: (1, C) f32
    ww_pad: (sW+2, W) f32         zero-padded W-resize matrix
    wk:     (9, C, C) if C % 128 == 0 else (9*C, C), dot_dtype
    returns (B, sH*sW, C) f32
    """
    B, nR, RW, Cin = y.shape
    R = tr + 2
    W = ww_pad.shape[1]
    assert RW == R * W
    C = wl.shape[1]
    s_h = nR * tr
    big_c = (C % 128 == 0)

    def kernel(y_ref, hs_ref, wl_ref, bl_ref, wwp_ref, wk_ref, bk_ref, o_ref):
        f32 = jnp.float32
        # Lateral 1x1 conv (Cin -> C) on the H-resized strip (incl. halo rows).
        lat = jnp.dot(y_ref[0, 0], wl_ref[...], preferred_element_type=f32)  # (R*W, C)
        lat3 = lat.reshape(R, W, C).astype(dot_dtype)
        # W-resize; ww_pad's zero first/last rows create the left/right conv halo.
        wwp32 = wwp_ref[...]
        wwb = jnp.broadcast_to(wwp32.astype(dot_dtype), (R, s_w + 2, W))
        up = jax.lax.dot_general(
            wwb, lat3, dimension_numbers=(((2,), (1,)), ((0,), (0,))),
            preferred_element_type=f32)                                      # (R, sW+2, C)
        # Exact lateral-bias placement: resize of a constant-per-channel field
        # is (wh row-sums) x (ww row-sums) * bias; the zero conv halo gets none.
        wsum = jnp.sum(wwp32, axis=1, keepdims=True)                          # (sW+2, 1)
        bias_field = hs_ref[0][:, :, None] * wsum[None, :, :]                 # (R, sW+2, 1)
        up = up + bias_field * bl_ref[...].reshape(1, 1, C)
        # 3x3 conv, padding=1 (halo already present in `up`).
        if big_c:
            # 9 accumulating (strip, C) x (C, C) matmuls: no 9C im2col buffer.
            acc = None
            for dh in range(3):
                for dw in range(3):
                    win = up[dh:dh + tr, dw:dw + s_w, :].reshape(tr * s_w, C)
                    part = jnp.dot(win.astype(dot_dtype), wk_ref[dh * 3 + dw],
                                   preferred_element_type=f32)
                    acc = part if acc is None else acc + part
        else:
            # Small C: a single K=9C matmul keeps the MXU fed.
            taps = jnp.concatenate(
                [up[dh:dh + tr, dw:dw + s_w, :] for dh in range(3) for dw in range(3)],
                axis=-1)                                                      # (TR, sW, 9C)
            acc = jnp.dot(taps.reshape(tr * s_w, 9 * C).astype(dot_dtype), wk_ref[...],
                          preferred_element_type=f32)
        o_ref[0] = (acc + bk_ref[...]).astype(o_ref.dtype)

    in_specs = [
        pl.BlockSpec((1, 1, RW, Cin), lambda b, r: (b, r, 0, 0)),
        pl.BlockSpec((1, R, 1), lambda b, r: (r, 0, 0)),
        pl.BlockSpec((Cin, C), lambda b, r: (0, 0)),
        pl.BlockSpec((1, C), lambda b, r: (0, 0)),
        pl.BlockSpec((s_w + 2, W), lambda b, r: (0, 0)),
        pl.BlockSpec(wk.shape, lambda b, r: (0,) * wk.ndim),
        pl.BlockSpec((1, C), lambda b, r: (0, 0)),
    ]
    flops = 2 * B * nR * (RW * Cin * C + R * (s_w + 2) * W * C
                          + tr * s_w * 9 * C * C)
    bytes_acc = (y.size * y.dtype.itemsize + hsums.size * 4 + ww_pad.size * 4
                 + (wl.size + wk.size) * jnp.dtype(dot_dtype).itemsize
                 + (bl.size + bk.size) * 4 + B * s_h * s_w * C * 4)
    return pl.pallas_call(
        kernel,
        out_shape=jax.ShapeDtypeStruct((B, s_h * s_w, C), jnp.float32),
        grid_spec=pltpu.PrefetchScalarGridSpec(
            num_scalar_prefetch=0,
            grid=(B, nR),
            in_specs=in_specs,
            out_specs=pl.BlockSpec((1, tr * s_w, C), lambda b, r: (b, r, 0)),
        ),
        compiler_params=pltpu.CompilerParams(
            dimension_semantics=("parallel", "parallel"),
            vmem_limit_bytes=_vmem_limit_bytes()),
        cost_estimate=pl.CostEstimate(flops=int(flops), transcendentals=0,
                                      bytes_accessed=int(bytes_acc)),
    )(y, hsums, wl, bl, ww_pad, wk, bk)


# ------------------------- glue: params & forward ---------------------------

def _xavier_uniform(key, shape, fan_in, fan_out):
    bound = math.sqrt(6.0 / (fan_in + fan_out))
    return jax.random.uniform(key, shape, jnp.float32, -bound, bound)


def init_params(key, in_channels, out_channels, num_outs):
    params = {"lateral": [], "output": []}
    for ci in in_channels:
        key, k1, k2 = jax.random.split(key, 3)
        w = _xavier_uniform(k1, (ci, out_channels), fan_in=ci, fan_out=out_channels)
        b = jax.random.uniform(k2, (1, out_channels), jnp.float32, 0.0, 1.0)
        params["lateral"].append((w, b))
    for _ in range(num_outs):
        key, k1, k2 = jax.random.split(key, 3)
        fan = out_channels * 9  # square 3x3 conv: fan_in == fan_out
        w = _xavier_uniform(k1, (3, 3, out_channels, out_channels),
                            fan_in=fan, fan_out=fan)  # HWIO
        b = jax.random.uniform(k2, (1, out_channels), jnp.float32, 0.0, 1.0)
        params["output"].append((w, b))
    return params


def vit_neck_forward(inputs, params, scales, cls_token=True, no_neck=False,
                     dot_dtype=jnp.bfloat16, strip_target=128):
    assert len(inputs) == len(params["lateral"])
    feats = []
    for x in inputs:
        if cls_token:
            x = x[:, 1:, :]
        B, N, ci = x.shape
        h = w = int(math.sqrt(N))
        feats.append((x, h, w, ci))
    if no_neck:
        return tuple(x.reshape(x.shape[0], h, w, ci) for x, h, w, ci in feats)

    lat_ps = params["lateral"]
    if len(feats) == 1:
        feats = feats * len(scales)
        lat_ps = lat_ps * len(scales)

    outs = []
    for (x, h, w, ci), s, (wl, bl), (w4, bk) in zip(feats, scales, lat_ps,
                                                    params["output"]):
        B = x.shape[0]
        C = wl.shape[1]
        wh = np.eye(h, dtype=np.float32) if s == 1 else _bilinear_1d(h, s)
        ww = np.eye(w, dtype=np.float32) if s == 1 else _bilinear_1d(w, s)
        s_h, s_w = wh.shape[0], ww.shape[0]
        tr = _pick_strip_rows(s_h, strip_target)
        n_r = s_h // tr

        # Zero-padded resize matrices: the padded rows become the 3x3 conv's
        # zero halo, so no in-kernel border concatenation is needed.
        wh_pad = np.zeros((s_h + 2, h), np.float32)
        wh_pad[1:-1] = wh
        wh_strips = np.stack([wh_pad[r * tr: r * tr + tr + 2] for r in range(n_r)])
        ww_pad = np.zeros((s_w + 2, w), np.float32)
        ww_pad[1:-1] = ww
        hsums = wh_strips.sum(axis=-1, keepdims=True)            # (nR, TR+2, 1)

        # Kernel 1: H-resize on the lane-dense raw tokens (commutes with the
        # 1x1 lateral conv; the bias is handled exactly in kernel 2).
        x_ld = x.reshape(B, h, w * ci).astype(dot_dtype)
        y = hresize_strips(x_ld, jnp.asarray(wh_strips), tr=tr, dot_dtype=dot_dtype)
        # Per-pixel view for the channel matmuls (contiguous XLA reshape).
        y = y.reshape(B, n_r, (tr + 2) * w, ci)

        # Kernel 2: fused lateral conv + W-resize + bias + 3x3 conv.
        wk = (w4.reshape(9, C, C) if C % 128 == 0
              else w4.reshape(9 * C, C)).astype(dot_dtype)
        o = fused_level(y, jnp.asarray(hsums), wl.astype(dot_dtype), bl,
                        jnp.asarray(ww_pad), wk, bk,
                        tr=tr, s_w=s_w, dot_dtype=dot_dtype)
        outs.append(o.reshape(B, s_h, s_w, C))                    # NHWC
    return tuple(outs)


# --------------------- pure-JAX reference (for checking) --------------------

def reference_forward(inputs, params, scales, cls_token=True):
    hp = jax.lax.Precision.HIGHEST
    feats = []
    for x in inputs:
        if cls_token:
            x = x[:, 1:, :]
        B, N, ci = x.shape
        h = w = int(math.sqrt(N))
        feats.append((x.reshape(B, h, w, ci), h, w))
    lat_ps = params["lateral"]
    if len(feats) == 1:
        feats = feats * len(scales)
        lat_ps = lat_ps * len(scales)
    outs = []
    for (x4, h, w), s, (wl, bl), (w4, bk) in zip(feats, scales, lat_ps,
                                                 params["output"]):
        lat = jnp.einsum('bhwi,io->bhwo', x4, wl, precision=hp) + bl.reshape(1, 1, 1, -1)
        if s != 1:
            wh = jnp.asarray(_bilinear_1d(h, s))
            ww = jnp.asarray(_bilinear_1d(w, s))
            lat = jnp.einsum('ph,qx,bhxc->bpqc', wh, ww, lat, precision=hp)
        out = jax.lax.conv_general_dilated(
            lat, w4, window_strides=(1, 1), padding='SAME',
            dimension_numbers=('NHWC', 'HWIO', 'NHWC'),
            precision=hp) + bk.reshape(1, 1, 1, -1)
        outs.append(out)
    return tuple(outs)


# ---------------------------------- main ------------------------------------

if __name__ == "__main__":
    B, H, W = 2, 8, 8
    in_channels = [48]
    out_channels = 32
    scales = [4, 2, 1]

    key = jax.random.PRNGKey(0)
    key, kx, kp = jax.random.split(key, 3)
    # ViT tokens including a cls token: (B, 1 + H*W, Cin)
    x = jax.random.normal(kx, (B, 1 + H * W, in_channels[0]), jnp.float32)
    params = init_params(kp, in_channels, out_channels, len(scales))

    refs = reference_forward([x], params, scales, cls_token=True)

    # f32 MXU path: tight structural check against the HIGHEST-precision ref.
    outs_f32 = vit_neck_forward([x], params, scales, cls_token=True,
                                dot_dtype=jnp.float32, strip_target=8)
    jax.block_until_ready(outs_f32)
    for o, r in zip(outs_f32, refs):
        err = float(jnp.max(jnp.abs(o - r)))
        assert err < 2e-3, ("f32 mismatch", err)

    # bf16 MXU path (performance default): scaled ~5% tolerance.
    outs_bf16 = vit_neck_forward([x], params, scales, cls_token=True,
                                 dot_dtype=jnp.bfloat16, strip_target=8)
    jax.block_until_ready(outs_bf16)
    for o, r in zip(outs_bf16, refs):
        tol = 5e-2 * (1.0 + float(jnp.max(jnp.abs(r))))
        err = float(jnp.max(jnp.abs(o - r)))
        assert err < tol, ("bf16 mismatch", err, tol)

    # match the PyTorch reference's NCHW convention
    outs_nchw = tuple(jnp.transpose(o, (0, 3, 1, 2)) for o in outs_bf16)
    expected = [(B, out_channels, H * s, W * s) for s in scales]
    assert [tuple(o.shape) for o in outs_nchw] == expected, \
        (tuple(o.shape for o in outs_nchw), expected)
    assert all(bool(jnp.isfinite(o).all()) for o in outs_nchw)

    # C >= 128 exercises the 9-accumulating-matmul conv path.
    params128 = init_params(jax.random.PRNGKey(1), in_channels, 128, 2)
    outs128 = vit_neck_forward([x[:1]], params128, [2, 1], cls_token=True,
                               dot_dtype=jnp.bfloat16, strip_target=8)
    refs128 = reference_forward([x[:1]], params128, [2, 1], cls_token=True)
    jax.block_until_ready(outs128)
    for o, r in zip(outs128, refs128):
        tol = 5e-2 * (1.0 + float(jnp.max(jnp.abs(r))))
        err = float(jnp.max(jnp.abs(o - r)))
        assert err < tol, ("bf16 C=128 mismatch", err, tol)

    print("KERNEL_OK")
</pallas_src>

<mosaic_0001>
module attributes {stable_mosaic.version = 11 : i64} {
  func.func @kernel(%arg0: i32, %arg1: i32, %arg2: memref<1x8x384xf32, #tpu.memory_space<vmem>>, %arg3: memref<1x10x8xf32, #tpu.memory_space<vmem>>, %arg4: memref<1x1x10x384xf32, #tpu.memory_space<vmem>>) attributes {dimension_semantics = [#tpu.dimension_semantics<parallel>, #tpu.dimension_semantics<parallel>], iteration_bounds = array<i64: 2, 4>, scalar_prefetch = 0 : i64, scratch_operands = 0 : i64, tpu.core_type = #tpu.core_type<tc>, window_params = [{transform_indices = @transform_0, window_bounds = array<i64: 1, 8, 384>}, {transform_indices = @transform_1, window_bounds = array<i64: 1, 10, 8>}, {transform_indices = @transform_2, window_bounds = array<i64: 1, 1, 10, 384>}]} {
    %c0 = arith.constant 0 : index
    %c0_0 = arith.constant 0 : index
    %c0_1 = arith.constant 0 : index
    %0 = vector.load %arg3[%c0, %c0_0, %c0_1] : memref<1x10x8xf32, #tpu.memory_space<vmem>>, vector<1x10x8xf32>
    %1 = vector.shape_cast %0 : vector<1x10x8xf32> to vector<10x8xf32>
    %c0_2 = arith.constant 0 : index
    %c0_3 = arith.constant 0 : index
    %c0_4 = arith.constant 0 : index
    %2 = vector.load %arg2[%c0_2, %c0_3, %c0_4] : memref<1x8x384xf32, #tpu.memory_space<vmem>>, vector<1x8x384xf32>
    %3 = vector.shape_cast %2 : vector<1x8x384xf32> to vector<8x384xf32>
    %cst = arith.constant dense<0.000000e+00> : vector<10x384xf32>
    %4 = tpu.matmul %1, %3, %cst {dimension_numbers = #tpu.dot_dimension_numbers<[1], [0], [0], [1], [0, 0, 1, 1], [], []>} : vector<10x8xf32>, vector<8x384xf32>, vector<10x384xf32> -> vector<10x384xf32>
    %c0_5 = arith.constant 0 : index
    %c0_6 = arith.constant 0 : index
    %c0_7 = arith.constant 0 : index
    %c0_8 = arith.constant 0 : index
    %5 = vector.load %arg4[%c0_5, %c0_6, %c0_7, %c0_8] : memref<1x1x10x384xf32, #tpu.memory_space<vmem>>, vector<1x1x10x384xf32>
    %6 = vector.shape_cast %5 : vector<1x1x10x384xf32> to vector<10x384xf32>
    %7 = vector.shape_cast %4 : vector<10x384xf32> to vector<1x1x10x384xf32>
    tpu.vector_store %arg4[%c0_5, %c0_6, %c0_7, %c0_8], %7 {strides = array<i32>} : memref<1x1x10x384xf32, #tpu.memory_space<vmem>>, vector<1x1x10x384xf32>,
    return
  }
  func.func @transform_0(%arg0: i32, %arg1: i32) -> (i32, i32, i32) {
    %c0_i32 = arith.constant 0 : i32
    %c0_i32_0 = arith.constant 0 : i32
    %c0_i32_1 = arith.constant 0 : i32
    return %arg0, %c0_i32, %c0_i32_0 : i32, i32, i32
  }
  func.func @transform_1(%arg0: i32, %arg1: i32) -> (i32, i32, i32) {
    %c0_i32 = arith.constant 0 : i32
    %c0_i32_0 = arith.constant 0 : i32
    %c0_i32_1 = arith.constant 0 : i32
    return %arg1, %c0_i32, %c0_i32_0 : i32, i32, i32
  }
  func.func @transform_2(%arg0: i32, %arg1: i32) -> (i32, i32, i32, i32) {
    %c0_i32 = arith.constant 0 : i32
    %c0_i32_0 = arith.constant 0 : i32
    %c0_i32_1 = arith.constant 0 : i32
    return %arg0, %arg1, %c0_i32, %c0_i32_0 : i32, i32, i32, i32
  }
}

</mosaic_0001>

<bundles_post_ra>
// kernel: tpu_custom_call.1
= control target key start
LH: loop header
LB: loop body
LE: loop exit
PB: predicated region body
PF: predicated region fallthrough
CT: control target
= control target key end

     0   :  { %s487_s9 = smov 0   ;;  %s489_s10 = smov 0   ;;  %s547_s0 = inlined_call_operand.vmem [shape: f32[2,8,384], index: 0, kind: input, shape index: {}]   ;;  %s548_s1 = inlined_call_operand.vmem [shape: f32[4,10,8], index: 1, kind: input, shape index: {}]   ;;  %s549_s2 = inlined_call_operand.vmem [shape: f32[2,4,10,384], index: 2, kind: output, shape index: {}]  }
   0x1   :  { %s491_s11 = smov 0   ;;  %s493_s12 = smov 0  }
   0x2   :  { %s495_s13 = smov 0  }
   0x3 LB: > { %s21_s14 = sadd.s32 1, %s462_s11  ;;  %s24_s15 = sadd.s32 1, %s466_s12  ;;  %s470_s13 = sphi %s495_s13, %s12_s13   ;;  %s466_s12 = sphi %s493_s12, %s553_s12   ;;  %s462_s11 = sphi %s491_s11, %s552_s11   ;;  %s458_s10 = sphi %s489_s10, %s551_s10   ;;  %s454_s9 = sphi %s487_s9, %s550_s9  }
   0x4   : > { %p22_p0 = scmp.ge.s32.totalorder %s21_s14, 4  ;;  %p375_p1 = scmp.ge.s32.totalorder %s470_s13, 1 }
   0x5   : > { %p136_p2 = scmp.lt.s32.totalorder %s470_s13, 9 }
   0x6   : > { %s555_s14 = smov (%p22_p0, %s21_s14), 0  ;;  %s557_s15 = smov (!%p22_p0, %s24_s15), %s466_s12 }
   0x7   : > { %p137_p3 = pnand %p375_p1, %p136_p2  ;;  %p26_p4 = scmp.ge.s32.totalorder %s557_s15, 2 }
   0x8   : > { %p167_p5 = scmp.lt.s32.totalorder (!%p137_p3), %s458_s10, 1  ;;  %p172_p6 = scmp.lt.s32.totalorder (!%p137_p3), %s454_s9, 3 }
   0x9   : > { %s559_s15 = smov (%p26_p4, %s557_s15), 0  ;;  %140 = sbr.rel (%p137_p3) target bundleno = 161 (0xa1), region = 28 }
   0xe   : > { %s561_s10 = smov (!%p167_p5, %s458_s10), 1  ;;  %s563_s9 = smov (!%p172_p6, %s454_s9), 3  ;;  %vm191_vm0 = vcmask 64512  }
   0xf   : > { %s390_s16 = smul.u32 24, %s561_s10  ;;  %s388_s17 = sshll.u32 %s563_s9, 4 }
  0x10   : > { %s391_s18 = smul.u32 6, %s563_s9  ;;  %s176_s24 = scalar_lea.vmem %s548_s1, %s388_s17 }
  0x11   : > { %s171_s21 = scalar_lea.vmem %s547_s0, %s390_s16  ;;  %v186_v1 = vld [vmem:[%s176_s24] sm:$0xff]  ;;  %v187_v4 = vld [vmem:[%s176_s24 + $0x8] sm:$0x3] }
  0x12   : > { %v190_v0 = vld [vmem:[%s171_s21 + $0x10] sm:$0xff]  ;;  %s183_s25 = sadd.s32 %s391_s18, %s390_s16  ;;  %v189_v2 = vld [vmem:[%s171_s21 + $0x8] sm:$0xff]  ;;  %v188_v3 = vld [vmem:[%s171_s21] sm:$0xff] }
  0x13   : > { %259 = vmatpush.msra.mxu2 %v190_v0  ;;  %236 = vmatpush.msra.mxu1 %v189_v2  ;;  %s379_s26 = sshll.u32 %s183_s25, 3 }
  0x14   : > { %384 = vmatmul.msk.f32.vlgmr.msra.gmra.mxu2 %vm191_vm0, %v186_v1  ;;  %382 = vmatmul.msk.f32.vlgmr.msra.gmra.mxu1 %vm191_vm0, %v186_v1  ;;  %s185_s29 = scalar_lea.vmem %s549_s2, %s379_s26 }
  0x15   : > { %389 = vmatpush.msra.mxu3 %v188_v3  ;;  %213 = vmatpush.msra.mxu0 %v188_v3 }
  0x16   : > { %381 = vmatmul.msk.f32.vlgmr.msra.gmra.mxu3 %vm191_vm0, %v187_v4  ;;  %380 = vmatmul.msk.f32.vlgmr.msra.gmra.mxu0 %vm191_vm0, %v186_v1 }
  0x1c   : > { %385 = vmatmul.msk.f32.gmra.mxu2 %vm191_vm0, %v187_v4  ;;  %383 = vmatmul.msk.f32.gmra.mxu1 %vm191_vm0, %v187_v4 }
  0x91   : > { %v238_v5 = vpop.f32.mrf.mxu1 }
  0x92   : > { %268 = vst [vmem:[%s185_s29 + $0x8] sm:$0xff] %v238_v5 }
  0x93   : > { %v215_v6 = vpop.f32.mrf.mxu0 }
  0x94   : > { %267 = vst [vmem:[%s185_s29] sm:$0xff] %v215_v6 }
  0x97   : > { %v261_v7 = vpop.f32.mrf.mxu2 }
  0x98   : > { %269 = vst [vmem:[%s185_s29 + $0x10] sm:$0xff] %v261_v7 }
  0x99   : > { %v218_v8 = vpop.f32.mrf.mxu3  ;;  %v241_v9 = vpop.f32.mrf.mxu1 }
  0x9a   : > { %270 = vst [vmem:[%s185_s29 + $0x18] sm:$0x3] %v218_v8 }
  0x9b   : > { %271 = vst [vmem:[%s185_s29 + $0x20] sm:$0x3] %v241_v9 }
  0x9f   : > { %v264_v10 = vpop.f32.mrf.mxu2 }
  0xa0   : > { %272 = vst [vmem:[%s185_s29 + $0x28] sm:$0x3] %v264_v10 }
  0xa1 PF: > { %s12_s13 = sadd.s32 1, %s470_s13   ;;  %s550_s9 = smov %s462_s11 }
  0xa2   : > { %p9_p7 = scmp.ge.s32.totalorder %s12_s13, 10   ;;  %s551_s10 = smov %s466_s12 }
  0xa3   : > { %s552_s11 = smov %s555_s14  ;;  %s553_s12 = smov %s559_s15 }
  0xa4   :  { %11 = sbr.rel (!%p9_p7) target bundleno = 3 (0x3), region = 61 }

</bundles_post_ra>
